<compile_context>
chip_gen: v6e
topology: v6e:2x2x1
jax: 0.10.0
libtpu: 0.0.40
codegen_flags: <defaults>
</compile_context>

<pallas_src>
import functools

import jax
import jax.numpy as jnp
import numpy as np
from jax.experimental import pallas as pl
from jax.experimental.pallas import tpu as pltpu


@functools.lru_cache(maxsize=None)
def _dft_mats(n, dtype_name, concat):
    """Forward-DFT matrices for length n.
    concat=True  -> single (n, 2n) matrix [cos | sin]  (stage-1 RHS)
    concat=False -> (cos, sin), each (n, n)            (stage-2 LHS)"""
    dt = np.dtype(dtype_name)
    j = np.arange(n)[:, None]
    k = np.arange(n)[None, :]
    ang = -2.0 * np.pi * (j * k) / float(n)
    cos = np.cos(ang).astype(np.float32)
    sin = np.sin(ang).astype(np.float32)
    if concat:
        return jnp.asarray(np.concatenate([cos, sin], axis=1), dtype=dt)
    return jnp.asarray(cos, dtype=dt), jnp.asarray(sin, dtype=dt)


def _vmem_capacity_bytes():
    try:
        return int(pltpu.get_tpu_info().vmem_capacity_bytes)
    except Exception:
        return 64 << 20  # conservative default: v7x per-core VMEM


def _vmem_bytes(bt, seq, dim, x_bytes, out_bytes, c_bytes, const_buffers=2):
    """Per-grid-step VMEM footprint matching the actual buffers."""
    x_in = 2 * bt * seq * dim * x_bytes                      # x tile (double-buffered)
    outs = 2 * 2 * bt * seq * dim * out_bytes                # real+imag (double-buffered)
    mats = const_buffers * (2 * dim * dim + 2 * seq * seq) * c_bytes
    ab_scratch = bt * seq * 2 * dim * c_bytes                # stage-1 result in cdt
    live = bt * seq * 2 * dim * 4                            # stage-1 f32 product (transient)
    live += bt * seq * dim * c_bytes                         # in-kernel cast of x
    live += 2 * seq * 2 * dim * 4                            # rc/ic per loop iteration
    return x_in + outs + mats + ab_scratch + live


def _pick_batch_tile(batch, seq, dim, budget, x_bytes, out_bytes, c_bytes):
    """Target ~1024 M-rows for the folded stage-1 GEMM (feeds the MXU, amortizes the
    ~0.35us/step grid overhead), keep n_steps >= 2 so the 'parallel' axis can shard
    across v7x's 2 TensorCores, require an exact grid, and stay within VMEM budget."""
    bt = max(1, min(batch, max(1, 1024 // max(seq, 1)), 64))
    if batch >= 2:
        bt = max(1, min(bt, batch // 2))
    while batch % bt:
        bt -= 1
    while bt > 1 and _vmem_bytes(bt, seq, dim, x_bytes, out_bytes, c_bytes) > budget:
        bt -= 1
        while batch % bt:
            bt -= 1
    return bt


def _fnet_kernel(x_ref, fd_ref, reS_ref, imS_ref, re_out_ref, im_out_ref, ab_ref,
                 *, bt, seq, dim, compute_dtype):
    """x_ref: (1, bt, seq, dim) input dtype; fd_ref: (dim, 2*dim); reS/imS: (seq, seq);
    outputs: (1, bt, seq, dim); ab_ref scratch: (bt, seq, 2*dim) compute dtype."""
    cdt = compute_dtype

    # ---- Stage 1: FFT over dim=-1 folded over all bt batch elements (M = bt*seq).
    # Cast to the MXU input dtype in-kernel (avoids a host-side HBM cast pass).
    x2 = x_ref[0].astype(cdt).reshape(bt * seq, dim)
    ab = jnp.dot(x2, fd_ref[...], preferred_element_type=jnp.float32)   # (bt*seq, 2*dim)
    ab_ref[...] = ab.reshape(bt, seq, 2 * dim).astype(cdt)              # keep in cdt

    # ---- Stage 2: FFT over dim=-2 per batch element. fori_loop bounds live ranges.
    def body(i, carry):
        abi = ab_ref[i]                                                  # (seq, 2*dim) cdt
        rc = jnp.dot(reS_ref[...], abi, preferred_element_type=jnp.float32)  # ReS@[a|b]
        ic = jnp.dot(imS_ref[...], abi, preferred_element_type=jnp.float32)  # ImS@[a|b]
        real = rc[:, :dim] - ic[:, dim:]          # ReS@a - ImS@b
        imag = rc[:, dim:] + ic[:, :dim]          # ReS@b + ImS@a (direct, no cancellation)
        # Dropout in eval mode == identity.
        re_out_ref[0, pl.ds(i, 1)] = real[None].astype(re_out_ref.dtype)
        im_out_ref[0, pl.ds(i, 1)] = imag[None].astype(im_out_ref.dtype)
        return carry

    jax.lax.fori_loop(0, bt, body, 0)


def fnet_block(x, *, compute_dtype=jnp.bfloat16, out_dtype=None):
    """x: (B, S, D) float -> (real, imag) of fft(fft(x, dim=-1), dim=-2), each (B, S, D).

    compute_dtype is the MXU input dtype (accumulation is always f32). Note that
    compute_dtype=jnp.float32 is numerically tighter but slower (multi-pass f32 MXU)."""
    batch, seq, dim = x.shape
    cdt = np.dtype(compute_dtype)
    odt = np.dtype(out_dtype) if out_dtype is not None else np.dtype(x.dtype)
    x_bytes = np.dtype(x.dtype).itemsize

    fd = _dft_mats(dim, cdt.name, True)            # (dim, 2*dim)  = [ReD | ImD]
    reS, imS = _dft_mats(seq, cdt.name, False)     # (seq, seq) each

    cap = _vmem_capacity_bytes()
    budget = int(0.80 * max(cap - (8 << 20), 24 << 20))
    bt = _pick_batch_tile(batch, seq, dim, budget, x_bytes, odt.itemsize, cdt.itemsize)
    n_steps = batch // bt

    est = _vmem_bytes(bt, seq, dim, x_bytes, odt.itemsize, cdt.itemsize)
    vmem_limit = int(min(max(int(1.5 * est) + (4 << 20), 32 << 20),
                         max(cap - (2 << 20), 32 << 20)))

    # Pure metadata reshape (no HBM pass): group bt batch elements per grid step.
    xg = x.reshape(n_steps, bt, seq, dim)

    kernel = functools.partial(_fnet_kernel, bt=bt, seq=seq, dim=dim, compute_dtype=cdt)
    out_shape = (jax.ShapeDtypeStruct((n_steps, bt, seq, dim), odt),
                 jax.ShapeDtypeStruct((n_steps, bt, seq, dim), odt))

    flops = batch * (4 * seq * dim * dim + 8 * seq * seq * dim)
    bytes_accessed = (batch * seq * dim * (x_bytes + 2 * odt.itemsize)
                      + (2 * dim * dim + 2 * seq * seq) * cdt.itemsize)
    cost = pl.CostEstimate(flops=flops, transcendentals=0, bytes_accessed=bytes_accessed)

    def _run(single_buffer_consts):
        # The DFT matrices have constant index_maps (DMA'd once); single-buffering
        # them halves their VMEM footprint.
        kw = dict(pipeline_mode=pl.Buffered(1)) if single_buffer_consts else {}
        grid_spec = pltpu.PrefetchScalarGridSpec(
            num_scalar_prefetch=0,
            grid=(n_steps,),
            in_specs=[
                pl.BlockSpec((1, bt, seq, dim), lambda i: (i, 0, 0, 0)),   # x (bt batches)
                pl.BlockSpec((dim, 2 * dim), lambda i: (0, 0), **kw),      # [ReD | ImD]
                pl.BlockSpec((seq, seq), lambda i: (0, 0), **kw),          # ReS
                pl.BlockSpec((seq, seq), lambda i: (0, 0), **kw),          # ImS
            ],
            out_specs=[
                pl.BlockSpec((1, bt, seq, dim), lambda i: (i, 0, 0, 0)),
                pl.BlockSpec((1, bt, seq, dim), lambda i: (i, 0, 0, 0)),
            ],
            scratch_shapes=[pltpu.VMEM((bt, seq, 2 * dim), cdt)],
        )
        return pl.pallas_call(
            kernel,
            out_shape=out_shape,
            grid_spec=grid_spec,
            cost_estimate=cost,
            compiler_params=pltpu.CompilerParams(
                dimension_semantics=("parallel",),
                vmem_limit_bytes=vmem_limit),
        )(xg, fd, reS, imS)

    try:
        out_r, out_i = _run(True)
    except (TypeError, ValueError, NotImplementedError, AttributeError, AssertionError,
            pltpu.LoweringException):
        # pipeline_mode=pl.Buffered(1) unsupported by this jax/libtpu combination:
        # fall back to default double buffering. Runtime errors (e.g. a genuine VMEM
        # overflow) are deliberately NOT swallowed.
        out_r, out_i = _run(False)

    real = out_r.reshape(batch, seq, dim)
    imag = out_i.reshape(batch, seq, dim)
    return real, imag


if __name__ == "__main__":
    key0, key1 = jax.random.split(jax.random.PRNGKey(0))

    def _check(x, f32_tol=1e-3, bf16_tol=2e-2):
        ref = jnp.fft.fft(jnp.fft.fft(x, axis=-1), axis=-2)

        # Exactness check in f32 compute mode.
        real_f32, imag_f32 = fnet_block(x, compute_dtype=jnp.float32)
        real_f32 = jax.block_until_ready(real_f32)
        imag_f32 = jax.block_until_ready(imag_f32)
        assert real_f32.shape == x.shape and imag_f32.shape == x.shape
        assert jnp.allclose(real_f32, ref.real, atol=f32_tol, rtol=f32_tol), "f32 real mismatch"
        assert jnp.allclose(imag_f32, ref.imag, atol=f32_tol, rtol=f32_tol), "f32 imag mismatch"

        # Default (bf16 MXU inputs, f32 accumulation) path against the spectrum magnitude.
        real, imag = fnet_block(x)
        real = jax.block_until_ready(real)
        imag = jax.block_until_ready(imag)
        scale = float(jnp.max(jnp.abs(ref))) + 1e-6
        assert float(jnp.max(jnp.abs(real - ref.real))) / scale < bf16_tol, "bf16 real mismatch"
        assert float(jnp.max(jnp.abs(imag - ref.imag))) / scale < bf16_tol, "bf16 imag mismatch"

    # Primary small shape (exercises n_steps = 2, bt = 1).
    x_a = jax.random.normal(key0, (2, 8, 32), dtype=jnp.float32)
    _check(x_a)

    # Slightly larger batch (exercises bt > 1 in the stage-2 fori_loop).
    x_b = jax.random.normal(key1, (4, 8, 32), dtype=jnp.float32)
    _check(x_b)

    print("KERNEL_OK")
</pallas_src>

<mosaic_0001>
module attributes {stable_mosaic.version = 11 : i64} {
  func.func @_fnet_kernel(%arg0: i32, %arg1: memref<1x1x8x32xf32, #tpu.memory_space<vmem>>, %arg2: memref<32x64xf32, #tpu.memory_space<vmem>>, %arg3: memref<8x8xf32, #tpu.memory_space<vmem>>, %arg4: memref<8x8xf32, #tpu.memory_space<vmem>>, %arg5: memref<1x1x8x32xf32, #tpu.memory_space<vmem>>, %arg6: memref<1x1x8x32xf32, #tpu.memory_space<vmem>>, %arg7: memref<1x8x64xf32, #tpu.memory_space<vmem>>) attributes {dimension_semantics = [#tpu.dimension_semantics<parallel>], iteration_bounds = array<i64: 2>, scalar_prefetch = 0 : i64, scratch_operands = 1 : i64, tpu.core_type = #tpu.core_type<tc>, window_params = [{transform_indices = @transform_0, window_bounds = array<i64: 1, 1, 8, 32>}, {pipeline_mode = #tpu.pipeline_mode<synchronous>, transform_indices = @transform_1, window_bounds = array<i64: 32, 64>}, {pipeline_mode = #tpu.pipeline_mode<synchronous>, transform_indices = @transform_2, window_bounds = array<i64: 8, 8>}, {pipeline_mode = #tpu.pipeline_mode<synchronous>, transform_indices = @transform_3, window_bounds = array<i64: 8, 8>}, {transform_indices = @transform_4, window_bounds = array<i64: 1, 1, 8, 32>}, {transform_indices = @transform_5, window_bounds = array<i64: 1, 1, 8, 32>}]} {
    %c0 = arith.constant 0 : index
    %c0_0 = arith.constant 0 : index
    %c0_1 = arith.constant 0 : index
    %c0_2 = arith.constant 0 : index
    %0 = vector.load %arg1[%c0, %c0_0, %c0_1, %c0_2] : memref<1x1x8x32xf32, #tpu.memory_space<vmem>>, vector<1x1x8x32xf32>
    %1 = vector.shape_cast %0 : vector<1x1x8x32xf32> to vector<1x8x32xf32>
    %2 = vector.shape_cast %1 : vector<1x8x32xf32> to vector<8x32xf32>
    %c0_3 = arith.constant 0 : index
    %c0_4 = arith.constant 0 : index
    %3 = vector.load %arg2[%c0_3, %c0_4] : memref<32x64xf32, #tpu.memory_space<vmem>>, vector<32x64xf32>
    %cst = arith.constant dense<0.000000e+00> : vector<8x64xf32>
    %4 = tpu.matmul %2, %3, %cst {dimension_numbers = #tpu.dot_dimension_numbers<[1], [0], [0], [1], [0, 0, 1, 1], [], []>} : vector<8x32xf32>, vector<32x64xf32>, vector<8x64xf32> -> vector<8x64xf32>
    %5 = vector.shape_cast %4 : vector<8x64xf32> to vector<1x8x64xf32>
    %c0_5 = arith.constant 0 : index
    %c0_6 = arith.constant 0 : index
    %c0_7 = arith.constant 0 : index
    %6 = vector.load %arg7[%c0_5, %c0_6, %c0_7] : memref<1x8x64xf32, #tpu.memory_space<vmem>>, vector<1x8x64xf32>
    tpu.vector_store %arg7[%c0_5, %c0_6, %c0_7], %5 {strides = array<i32>} : memref<1x8x64xf32, #tpu.memory_space<vmem>>, vector<1x8x64xf32>,
    %c0_i32 = arith.constant 0 : i32
    %7 = arith.index_cast %c0_i32 : i32 to index
    %c0_8 = arith.constant 0 : index
    %c0_9 = arith.constant 0 : index
    %8 = vector.load %arg7[%7, %c0_8, %c0_9] : memref<1x8x64xf32, #tpu.memory_space<vmem>>, vector<1x8x64xf32>
    %9 = vector.shape_cast %8 : vector<1x8x64xf32> to vector<8x64xf32>
    %c0_10 = arith.constant 0 : index
    %c0_11 = arith.constant 0 : index
    %10 = vector.load %arg3[%c0_10, %c0_11] : memref<8x8xf32, #tpu.memory_space<vmem>>, vector<8x8xf32>
    %cst_12 = arith.constant dense<0.000000e+00> : vector<8x64xf32>
    %11 = tpu.matmul %10, %9, %cst_12 {dimension_numbers = #tpu.dot_dimension_numbers<[1], [0], [0], [1], [0, 0, 1, 1], [], []>} : vector<8x8xf32>, vector<8x64xf32>, vector<8x64xf32> -> vector<8x64xf32>
    %c0_13 = arith.constant 0 : index
    %c0_14 = arith.constant 0 : index
    %12 = vector.load %arg4[%c0_13, %c0_14] : memref<8x8xf32, #tpu.memory_space<vmem>>, vector<8x8xf32>
    %cst_15 = arith.constant dense<0.000000e+00> : vector<8x64xf32>
    %13 = tpu.matmul %12, %9, %cst_15 {dimension_numbers = #tpu.dot_dimension_numbers<[1], [0], [0], [1], [0, 0, 1, 1], [], []>} : vector<8x8xf32>, vector<8x64xf32>, vector<8x64xf32> -> vector<8x64xf32>
    %14 = vector.extract_strided_slice %11 {offsets = [0, 0], sizes = [8, 32], strides = [1, 1]} : vector<8x64xf32> to vector<8x32xf32>
    %15 = vector.extract_strided_slice %13 {offsets = [0, 32], sizes = [8, 32], strides = [1, 1]} : vector<8x64xf32> to vector<8x32xf32>
    %16 = arith.subf %14, %15 : vector<8x32xf32>
    %17 = vector.extract_strided_slice %11 {offsets = [0, 32], sizes = [8, 32], strides = [1, 1]} : vector<8x64xf32> to vector<8x32xf32>
    %18 = vector.extract_strided_slice %13 {offsets = [0, 0], sizes = [8, 32], strides = [1, 1]} : vector<8x64xf32> to vector<8x32xf32>
    %19 = arith.addf %17, %18 : vector<8x32xf32>
    %20 = vector.shape_cast %16 : vector<8x32xf32> to vector<1x8x32xf32>
    %c0_16 = arith.constant 0 : index
    %21 = arith.index_cast %c0_i32 : i32 to index
    %c0_17 = arith.constant 0 : index
    %c0_18 = arith.constant 0 : index
    %22 = vector.load %arg5[%c0_16, %21, %c0_17, %c0_18] : memref<1x1x8x32xf32, #tpu.memory_space<vmem>>, vector<1x1x8x32xf32>
    %23 = vector.shape_cast %22 : vector<1x1x8x32xf32> to vector<1x8x32xf32>
    %24 = vector.shape_cast %20 : vector<1x8x32xf32> to vector<1x1x8x32xf32>
    tpu.vector_store %arg5[%c0_16, %21, %c0_17, %c0_18], %24 {strides = array<i32>} : memref<1x1x8x32xf32, #tpu.memory_space<vmem>>, vector<1x1x8x32xf32>,
    %25 = vector.shape_cast %19 : vector<8x32xf32> to vector<1x8x32xf32>
    %c0_19 = arith.constant 0 : index
    %26 = arith.index_cast %c0_i32 : i32 to index
    %c0_20 = arith.constant 0 : index
    %c0_21 = arith.constant 0 : index
    %27 = vector.load %arg6[%c0_19, %26, %c0_20, %c0_21] : memref<1x1x8x32xf32, #tpu.memory_space<vmem>>, vector<1x1x8x32xf32>
    %28 = vector.shape_cast %27 : vector<1x1x8x32xf32> to vector<1x8x32xf32>
    %29 = vector.shape_cast %25 : vector<1x8x32xf32> to vector<1x1x8x32xf32>
    tpu.vector_store %arg6[%c0_19, %26, %c0_20, %c0_21], %29 {strides = array<i32>} : memref<1x1x8x32xf32, #tpu.memory_space<vmem>>, vector<1x1x8x32xf32>,
    %c1_i32 = arith.constant 1 : i32
    return
  }
  func.func @transform_0(%arg0: i32) -> (i32, i32, i32, i32) {
    %c0_i32 = arith.constant 0 : i32
    %c0_i32_0 = arith.constant 0 : i32
    %c0_i32_1 = arith.constant 0 : i32
    %c0_i32_2 = arith.constant 0 : i32
    return %arg0, %c0_i32, %c0_i32_0, %c0_i32_1 : i32, i32, i32, i32
  }
  func.func @transform_1(%arg0: i32) -> (i32, i32) {
    %c0_i32 = arith.constant 0 : i32
    %c0_i32_0 = arith.constant 0 : i32
    %c0_i32_1 = arith.constant 0 : i32
    return %c0_i32, %c0_i32_0 : i32, i32
  }
  func.func @transform_2(%arg0: i32) -> (i32, i32) {
    %c0_i32 = arith.constant 0 : i32
    %c0_i32_0 = arith.constant 0 : i32
    %c0_i32_1 = arith.constant 0 : i32
    return %c0_i32, %c0_i32_0 : i32, i32
  }
  func.func @transform_3(%arg0: i32) -> (i32, i32) {
    %c0_i32 = arith.constant 0 : i32
    %c0_i32_0 = arith.constant 0 : i32
    %c0_i32_1 = arith.constant 0 : i32
    return %c0_i32, %c0_i32_0 : i32, i32
  }
  func.func @transform_4(%arg0: i32) -> (i32, i32, i32, i32) {
    %c0_i32 = arith.constant 0 : i32
    %c0_i32_0 = arith.constant 0 : i32
    %c0_i32_1 = arith.constant 0 : i32
    %c0_i32_2 = arith.constant 0 : i32
    return %arg0, %c0_i32, %c0_i32_0, %c0_i32_1 : i32, i32, i32, i32
  }
  func.func @transform_5(%arg0: i32) -> (i32, i32, i32, i32) {
    %c0_i32 = arith.constant 0 : i32
    %c0_i32_0 = arith.constant 0 : i32
    %c0_i32_1 = arith.constant 0 : i32
    %c0_i32_2 = arith.constant 0 : i32
    return %arg0, %c0_i32, %c0_i32_0, %c0_i32_1 : i32, i32, i32, i32
  }
}

</mosaic_0001>

<bundles_post_ra>
// kernel: tpu_custom_call.1
= control target key start
LH: loop header
LB: loop body
LE: loop exit
PB: predicated region body
PF: predicated region fallthrough
CT: control target
= control target key end

     0   :  { %11 = vsyncpa [#allocation4], 0  ;;  %s1308_s0 = inlined_call_operand.hbm [shape: f32[2,1,8,32], index: 0, kind: input, shape index: {}]   ;;  %s1309_s1 = inlined_call_operand.hbm [shape: f32[32,64], index: 1, kind: input, shape index: {}]   ;;  %s1310_s2 = inlined_call_operand.hbm [shape: f32[8,8], index: 2, kind: input, shape index: {}]   ;;  %s1311_s3 = inlined_call_operand.hbm [shape: f32[8,8], index: 3, kind: input, shape index: {}]   ;;  %s1312_s4 = inlined_call_operand.hbm [shape: f32[2,1,8,32], index: 4, kind: output, shape index: {0}]   ;;  %s1313_s5 = inlined_call_operand.hbm [shape: f32[2,1,8,32], index: 5, kind: output, shape index: {1}]  }
   0x1   :  { %13 = vsyncpa [#allocation4 + $0x1], 0 }
   0x2   :  { %14 = vsyncpa [#allocation7], 0 }
   0x3   :  { %15 = vsyncpa [#allocation10], 0 }
   0x4   :  { %16 = vsyncpa [#allocation5], 0 }
   0x5   :  { %18 = vsyncpa [#allocation5 + $0x1], 0 }
   0x6   :  { %19 = vsyncpa [#allocation13], 0 }
   0x7   :  { %21 = vsyncpa [#allocation13 + $0x1], 0  ;;  %s1094_s18 = smov 0   ;;  %s1096_s19 = smov 0  }
   0x8   :  { %s1098_s20 = smov 0   ;;  %s1100_s21 = smov 0  }
   0x9 LB: > { %s1115_s22 = sadd.s32 4294967295, %s1050_s21   ;;  %s700_s23 = sadd.s32 4294967294, %s1050_s21   ;;  %s1050_s21 = sphi %s1100_s21, %s1337_s21   ;;  %s1046_s20 = sphi %s1098_s20, %s1336_s20   ;;  %s1042_s19 = sphi %s1096_s19, %s1335_s19   ;;  %s1038_s18 = sphi %s1094_s18, %s1334_s18  }
   0xa   : > { %p47_p0 = scmp.ne.s32.totalorder %s1042_s19, %s1038_s18  ;;  %p1314_p1 = scmp.eq.s32.totalorder %s1115_s22, 0 }
   0xb   : > { %p140_p3 = scmp.eq.s32.totalorder %s700_s23, 1  ;;  %p701_p5 = scmp.ge.s32.totalorder %s1050_s21, 1 }
   0xc   : > { %p1124_p4 = por %p1314_p1, %p47_p0  ;;  %p173_p7 = scmp.lt.s32.totalorder %s1050_s21, 3 }
   0xd   : > { %p1129_p6 = por %p140_p3, %p47_p0  ;;  %s1052_s27 = smov [#allocation6]  }
   0xe   : > { %s1318_s24 = scalar_select %p1124_p4, 1, 0 }
   0xf   : > { %s1319_s25 = scalar_select %p1129_p6, 1, 0 }
  0x10   : > { %p1134_p8 = pnand %p701_p5, %p173_p7  ;;  %s185_s28 = sshll.u32 %s1052_s27, 4  ;;  %s186_s28 = int_to_ptr.vmem [resolvable:$true] %s185_s28 }
  0x11   : > { %s1053_s30 = smov [#allocation8]   ;;  %s1054_s7 = smov [#allocation9]  }
  0x12   : > { %s1320_s26 = scalar_select %p1134_p8, 1, 0 }
  0x13   : > { %p772_p9 = pneg %p1134_p8  ;;  %s199_s6 = sshll.u32 %s1053_s30, 4  ;;  %s200_s6 = int_to_ptr.vmem [resolvable:$true] %s199_s6 }
  0x14   : > { %s210_s8 = sshll.u32 %s1054_s7, 4  ;;  %s853_s9 = scalar_lea.vmem %s186_s28, 512  ;;  %s211_s8 = int_to_ptr.vmem [resolvable:$true] %s210_s8 }
  0x15   : > { %p1143_p11 = pnand %p772_p9, %p1314_p1  ;;  %p854_p13 = scmp.ne.s32.totalorder %s186_s28, %s853_s9 }
  0x16   : > { %p861_p5 = scmp.lt.s32.totalorder %s186_s28, %s186_s28  ;;  %p862_p7 = scmp.lt.s32.totalorder %s853_s9, %s853_s9 }
  0x17   : > { %p844_p12 = pneg %p1143_p11 }
  0x18   : > { %p863_p9 = por %p862_p7, %p861_p5 }
  0x19   : > { %p856_p0 = pnand %p854_p13, %p844_p12 }
  0x1b   : > { %p857_p3 = pneg %p856_p0 }
  0x1d   : > { %p864_p10 = pnand %p863_p9, %p857_p3 }
  0x1f   : > { %867 = shalt.err (!%p864_p10)
}
  0x20   : > { %s1055_s10 = smov 128   ;;  %s1056_s11 = smov 8  }
  0x21   : > { %775 = dma.hbm_to_vmem [thread:$0]  (!%p1143_p11), %s1309_s1, 512, %s186_s28, [#allocation7], %s1055_s10, %s1055_s10, %s1056_s11  }
  0x22   : > { %s879_s14 = scalar_lea.vmem %s200_s6, 128  ;;  %p887_p2 = scmp.lt.s32.totalorder %s200_s6, %s200_s6 }
  0x23   : > { %p880_p1 = scmp.ne.s32.totalorder %s200_s6, %s879_s14  ;;  %p888_p6 = scmp.lt.s32.totalorder %s879_s14, %s879_s14 }
  0x25   : > { %p882_p13 = pnand %p880_p1, %p844_p12  ;;  %p889_p5 = por %p888_p6, %p887_p2 }
  0x27   : > { %p883_p0 = pneg %p882_p13 }
  0x29   : > { %p890_p3 = pnand %p889_p5, %p883_p0 }
  0x2b   : > { %893 = shalt.err (!%p890_p3)
}
  0x2c   : > { %778 = dma.hbm_to_vmem [thread:$0]  (!%p1143_p11), %s1310_s2, 128, %s200_s6, [#allocation7]  }
  0x2d   : > { %s905_s17 = scalar_lea.vmem %s211_s8, 128  ;;  %p913_p9 = scmp.lt.s32.totalorder %s211_s8, %s211_s8 }
  0x2e   : > { %p906_p10 = scmp.ne.s32.totalorder %s211_s8, %s905_s17  ;;  %p914_p13 = scmp.lt.s32.totalorder %s905_s17, %s905_s17 }
  0x30   : > { %p908_p7 = pnand %p906_p10, %p844_p12  ;;  %p915_p4 = por %p914_p13, %p913_p9 }
  0x32   : > { %p909_p1 = pneg %p908_p7 }
  0x34   : > { %p916_p2 = pnand %p915_p4, %p909_p1 }
  0x36   : > { %919 = shalt.err (!%p916_p2)
}
  0x37   : > { %781 = dma.hbm_to_vmem [thread:$0]  (!%p1143_p11), %s1311_s3, 128, %s211_s8, [#allocation10]  }
  0x38   : > { %s1174_s28 = sadd.s32 1, %s1050_s21   ;;  %s34_s29 = sadd.s32 1, %s1046_s20 }
  0x39   : > { %s31_s30 = ssub.s32 %s1050_s21, %s1174_s28  ;;  %p41_p6 = scmp.ne.s32.totalorder %s1046_s20, %s1042_s19 }
  0x3a   : > { %p32_p4 = scmp.eq.s32.totalorder %s31_s30, 0  ;;  %p42_p12 = scmp.eq.s32.totalorder %s1050_s21, 0 }
  0x3b   : > { %p796_p0 = scmp.lt.s32.totalorder %s1050_s21, 2  ;;  %p1322_p3 = scmp.eq.s32.totalorder %s1115_s22, 1 }
  0x3c   : > { %s1184_s6 = scalar_select %p32_p4, %s1046_s20, %s34_s29  }
  0x3d   : > { %p43_p5 = por %p42_p12, %p41_p6  ;;  %p1188_p10 = por %p1322_p3, %p41_p6 }
  0x3e   : > { %s221_s9 = sand.u32 1, %s1046_s20   ;;  %s707_s10 = sshll.u32 %s1050_s21, 7 }
  0x3f   : > { %s1323_s7 = scalar_select %p1188_p10, 1, 0 }
  0x40   : > { %s706_s8 = sshll.u32 %s221_s9, 3  ;;  %s1197_s13 = scalar_lea.hbm %s1308_s0, %s707_s10 }
  0x41   : > { %s225_s14 = scalar_lea.vmem [#allocation3], %s706_s8  ;;  %p1199_p11 = pnand %p796_p0, %p43_p5 }
  0x42   : > { %s232_s15 = sshll.u32 %s225_s14, 4  ;;  %s222_s17 = scalar_lea.sflag [#allocation4], %s221_s9  ;;  %s233_s15 = int_to_ptr.vmem [resolvable:$true] %s232_s15 }
  0x43   : > { %s920_s23 = scalar_lea.hbm %s1197_s13, 128  ;;  %p922_p1 = pneg %p1199_p11 }
  0x44   : > { %p921_p7 = scmp.ne.s32.totalorder %s1197_s13, %s920_s23  ;;  %s925_s29 = scalar_lea.hbm %s1308_s0, 256 }
  0x45   : > { %p926_p2 = scmp.lt.s32.totalorder %s1197_s13, %s1308_s0  ;;  %p927_p4 = scmp.lt.s32.totalorder %s925_s29, %s920_s23 }
  0x46   : > { %p923_p9 = pnand %p922_p1, %p921_p7 }
  0x47   : > { %p928_p6 = por %p927_p4, %p926_p2 }
  0x48   : > { %p924_p13 = pneg %p923_p9 }
  0x4a   : > { %p929_p12 = pnand %p928_p6, %p924_p13 }
  0x4c   : > { %932 = shalt.err (!%p929_p12)
}
  0x4d   : > { %s933_s11 = scalar_lea.vmem %s233_s15, 128  ;;  %s1057_s9 = smov [#allocation3]  }
  0x4e   : > { %p934_p0 = scmp.ne.s32.totalorder %s233_s15, %s933_s11  ;;  %s938_s12 = sshll.u32 %s1057_s9, 4  ;;  %s939_s12 = int_to_ptr.vmem [resolvable:$false] %s938_s12 }
  0x4f   : > { %s940_s14 = scalar_lea.vmem %s939_s12, 256  ;;  %p941_p7 = scmp.lt.s32.totalorder %s233_s15, %s939_s12 }
  0x50   : > { %p936_p5 = pnand %p934_p0, %p922_p1  ;;  %p942_p9 = scmp.lt.s32.totalorder %s940_s14, %s933_s11 }
  0x52   : > { %p937_p3 = pneg %p936_p5  ;;  %p943_p10 = por %p942_p9, %p941_p7 }
  0x54   : > { %p944_p8 = pnand %p943_p10, %p937_p3 }
  0x56   : > { %947 = shalt.err (!%p944_p8)
}
  0x57   : > { %785 = dma.hbm_to_vmem [thread:$0]  (!%p1199_p11), %s1197_s13, 128, %s233_s15, %s222_s17  }
  0x58   : > { %p1325_p13 = scmp.ne.s32.totalorder %s1320_s26, 0 }
  0x59   : > { %s1220_s23 = sand.u32 (!%p1325_p13), 1, %s1042_s19   ;;  %p1326_p10 = scmp.ne.s32.totalorder (!%p1325_p13), %s1318_s24, 0 }
  0x5a   : > { %241 = sbr.rel (%p1325_p13) target bundleno = 756 (0x2f4), region = 36  ;;  %s1223_s27 = sshll.u32 (!%p1325_p13), %s1220_s23, 3 }
  0x5b   : > { %s244_s30 = scalar_lea.sflag (!%p1325_p13), [#allocation4], %s1220_s23  ;;  %s247_s29 = scalar_lea.vmem (!%p1325_p13), [#allocation3], %s1223_s27 }
  0x5f   : > { %1017 = dma.done.wait (%p1326_p10), %s244_s30, 128  }
  0x60   : > { %1019 = vsyncadd (%p1326_p10), %s244_s30, 4294967168  ;;  %p1327_p8 = scmp.eq.s32.totalorder %s1115_s22, 0 }
  0x62   : > { %1021 = dma.done.wait (%p1327_p8), [#allocation7], 640   ;;  %p1328_p11 = pmov %p1327_p8 }
  0x63   : > { %p1329_p1 = pmov %p1327_p8 }
  0x64   : > { %1023 = vsyncadd (%p1328_p11), [#allocation7], 4294966656 }
  0x65   : > { %1025 = dma.done.wait (%p1329_p1), [#allocation10], 128   ;;  %p1330_p2 = pmov %p1329_p1 }
  0x66   : > { %v1058_v0 = vmov 0.0   ;;  %vm1059_vm0 = vmmov 0   ;;  %v295_v1 = vld [vmem:[#allocation6 + $0x18] sm:$0xff]  ;;  %v294_v2 = vld [vmem:[#allocation6 + $0x10] sm:$0xff]  ;;  %v293_v3 = vld [vmem:[#allocation6 + $0x8] sm:$0xff]  ;;  %vm296_vm1 = vcmask 261120  }
  0x67   : > { %1027 = vsyncadd (%p1330_p2), [#allocation10], 4294967168  ;;  %733 = vmatprep.subr.mxu0 %v1058_v0  ;;  %741 = vmatprep.mubr.msk.f32.mxu0 %vm1059_vm0, %v1058_v0  ;;  %v292_v4 = vld [vmem:[#allocation6] sm:$0xff]  ;;  %v291_v5 = vld [vmem:[%s247_s29] sm:$0xff]  ;;  %vm370_vm2 = vcmask 523264   ;;  %vm374_vm3 = vcmask 64512  }
  0x68   : > { %744 = vmatprep.subr.mxu1 %v1058_v0  ;;  %746 = vmatprep.mubr.msk.f32.mxu1 %vm1059_vm0, %v1058_v0  ;;  %v373_v8 = vld [vmem:[#allocation8] sm:$0xff]  ;;  %v448_v10 = vld [vmem:[#allocation9] sm:$0xff]  ;;  %s1060_s24 = smov 32   ;;  %s1061_s26 = smov 96  }
  0x69   : > { %734 = vmatpush3.msra.mxu0 %v295_v1  ;;  %s720_s13 = sshll.u32 %s1115_s22, 7  ;;  %s283_s15 = scalar_lea.vmem [#allocation11], %s1223_s27 }
  0x6a   : > { %735 = vmatprep.subr.mxu0 %v1058_v0  ;;  %s556_s16 = sshll.u32 %s283_s15, 4  ;;  %s554_s8 = scalar_lea.hbm %s1312_s4, %s720_s13  ;;  %s557_s16 = int_to_ptr.vmem [resolvable:$true] %s556_s16 }
  0x6b   : > { %736 = vmatpush3.msra.mxu0 %v294_v2  ;;  %s538_s11 = scalar_lea.sflag [#allocation5], %s1220_s23  ;;  %s948_s9 = scalar_lea.vmem %s557_s16, 128 }
  0x6c   : > { %737 = vmatprep.subr.mxu0 %v1058_v0  ;;  %p949_p4 = scmp.ne.s32.totalorder %s557_s16, %s948_s9  ;;  %p1331_p6 = scmp.ne.s32.totalorder %s1323_s7, 0 }
  0x6d   : > { %738 = vmatpush3.msra.mxu0 %v293_v3  ;;  %s1062_s12 = smov [#allocation11]  }
  0x6e   : > { %739 = vmatprep.subr.mxu0 %v1058_v0  ;;  %p950_p12 = pnand %p949_p4, %p1331_p6  ;;  %s952_s14 = sshll.u32 %s1062_s12, 4  ;;  %s953_s14 = int_to_ptr.vmem [resolvable:$false] %s952_s14 }
  0x6f   : > { %740 = vmatpush3.msra.mxu0 %v292_v4  ;;  %s954_s30 = scalar_lea.vmem %s953_s14, 256  ;;  %p955_p5 = scmp.lt.s32.totalorder %s557_s16, %s953_s14 }
  0x70   : > { %742 = vmatmul.mubr.msk.f32.vlgmr.msra.gmra.mxu0 %vm296_vm1, %v291_v5  ;;  %p951_p0 = pneg %p950_p12  ;;  %p956_p3 = scmp.lt.s32.totalorder %s954_s30, %s948_s9 }
  0x72   : > { %p957_p7 = por %p956_p3, %p955_p5 }
  0x74   : > { %p958_p9 = pnand %p957_p7, %p951_p0 }
 0x130   : > { %v366_v6 = vpop.f32.mrf.mxu0 }
 0x131   : > { %371 = vst.msk [vmem:[#allocation2] sm:$0xff] %vm370_vm2, %v366_v6 }
 0x132   : > { %v743_v7 = vpop.f32.mrf.mxu0 }
 0x138   : > { %v372_v9 = vld [vmem:[#allocation2] sm:$0xff] }
 0x139   : > { %745 = vmatpush3.msra.mxu1 %v372_v9 }
 0x13a   : > { %747 = vmatmul.mubr.msk.f32.vlgmr.msra.gmra.mxu1 %vm374_vm3, %v373_v8  ;;  %749 = vmatprep.subr.mxu1 %v1058_v0 }
 0x13b   : > { %750 = vmatpush3.msra.mxu1 %v372_v9  ;;  %751 = vmatprep.mubr.msk.f32.mxu1 %vm1059_vm0, %v1058_v0 }
 0x13e   : > { %752 = vmatmul.mubr.msk.f32.vlgmr.msra.gmra.mxu1 %vm374_vm3, %v448_v10 }
 0x1fa   : > { %v444_v11 = vpop.f32.mrf.mxu1 }
 0x1fc   : > { %v748_v12 = vpop.f32.mrf.mxu1 }
 0x1fe   : > { %v518_v13 = vpop.f32.mrf.mxu1 }
 0x1ff   : > { %527 = vrot.lane.b32.xlu0 %v518_v13, %s1060_s24 }
 0x200   : > { %v753_v14 = vpop.f32.mrf.mxu1 }
 0x203   : > { %523 = vrot.lane.b32.xlu0 %v518_v13, %s1061_s26 }
 0x271   : > { %v528_v15 = vpop.permute.xlu0 %527 }
 0x272   : > { %v530_v16 = vadd.f32 %v528_v15, %v444_v11 }
 0x274   : > { %533 = vrot.lane.b32.xlu1 %v530_v16, %s1061_s26 }
 0x275   : > { %v524_v17 = vpop.permute.xlu0 %523 }
 0x276   : > { %v526_v18 = vsub.f32 %v444_v11, %v524_v17 }
 0x278   : > { %531 = vst.msk [vmem:[%s283_s15] sm:$0xff] %vm296_vm1, %v526_v18 }
 0x279   : > { %961 = shalt.err (!%p958_p9)
}
 0x27a   : > { %s962_s29 = scalar_lea.hbm %s554_s8, 128  ;;  %s966_s15 = scalar_lea.hbm %s1312_s4, 256 }
 0x27b   : > { %p963_p13 = scmp.ne.s32.totalorder %s554_s8, %s962_s29  ;;  %p967_p11 = scmp.lt.s32.totalorder %s554_s8, %s1312_s4 }
 0x27c   : > { %p968_p1 = scmp.lt.s32.totalorder %s966_s15, %s962_s29 }
 0x27d   : > { %p964_p10 = pnand %p963_p13, %p1331_p6 }
 0x27e   : > { %p969_p2 = por %p968_p1, %p967_p11 }
 0x27f   : > { %p965_p8 = pneg %p964_p10 }
 0x281   : > { %p970_p4 = pnand %p969_p2, %p965_p8 }
 0x283   : > { %973 = shalt.err (!%p970_p4)
}
 0x284   : > { %768 = dma.vmem_to_hbm [thread:$0]  (%p1331_p6), %s557_s16, 128, %s554_s8, %s538_s11  }
 0x285   : > { %s290_s9 = scalar_lea.vmem [#allocation12], %s1223_s27  ;;  %s1270_s24 = scalar_lea.hbm %s1313_s5, %s720_s13 }
 0x286   : > { %s569_s12 = sshll.u32 %s290_s9, 4  ;;  %s543_s29 = scalar_lea.sflag [#allocation13], %s1220_s23  ;;  %s570_s12 = int_to_ptr.vmem [resolvable:$true] %s569_s12 }
 0x287   : > { %s974_s26 = scalar_lea.vmem %s570_s12, 128  ;;  %s1063_s15 = smov [#allocation12]  }
 0x288   : > { %p975_p12 = scmp.ne.s32.totalorder %s570_s12, %s974_s26  ;;  %s978_s16 = sshll.u32 %s1063_s15, 4  ;;  %s979_s16 = int_to_ptr.vmem [resolvable:$false] %s978_s16 }
 0x289   : > { %s980_s27 = scalar_lea.vmem %s979_s16, 256  ;;  %p981_p3 = scmp.lt.s32.totalorder %s570_s12, %s979_s16 }
 0x28a   : > { %p976_p0 = pnand %p975_p12, %p1331_p6  ;;  %p982_p7 = scmp.lt.s32.totalorder %s980_s27, %s974_s26 }
 0x28c   : > { %p977_p5 = pneg %p976_p0  ;;  %p983_p9 = por %p982_p7, %p981_p3 }
 0x28e   : > { %p984_p13 = pnand %p983_p9, %p977_p5 }
 0x2e6   : > { %v534_v19 = vpop.permute.xlu1 %533 }
 0x2e7   : > { %536 = vst.msk [vmem:[%s290_s9] sm:$0xff] %vm296_vm1, %v534_v19 }
 0x2e8   : > { %987 = shalt.err (!%p984_p13)
}
 0x2e9   : > { %s988_s22 = scalar_lea.hbm %s1270_s24, 128  ;;  %s992_s8 = scalar_lea.hbm %s1313_s5, 256 }
 0x2ea   : > { %p989_p10 = scmp.ne.s32.totalorder %s1270_s24, %s988_s22  ;;  %p993_p1 = scmp.lt.s32.totalorder %s1270_s24, %s1313_s5 }
 0x2eb   : > { %p994_p2 = scmp.lt.s32.totalorder %s992_s8, %s988_s22 }
 0x2ec   : > { %p990_p8 = pnand %p989_p10, %p1331_p6 }
 0x2ed   : > { %p995_p4 = por %p994_p2, %p993_p1 }
 0x2ee   : > { %p991_p11 = pneg %p990_p8 }
 0x2f0   : > { %p996_p12 = pnand %p995_p4, %p991_p11 }
 0x2f2   : > { %999 = shalt.err (!%p996_p12)
}
 0x2f3   : > { %769 = dma.vmem_to_hbm [thread:$0]  (%p1331_p6), %s570_s12, 128, %s1270_s24, %s543_s29  }
 0x2f4 PF: > { %s581_s10 = sand.u32 1, %s1038_s18   ;;  %p1332_p0 = scmp.ne.s32.totalorder %s1319_s25, 0 }
 0x2f5   : > { %p1333_p5 = scmp.ge.s32.totalorder %s1050_s21, 2  ;;  %s582_s9 = scalar_lea.sflag [#allocation5], %s581_s10 }
 0x2f7   : > { %p787_p3 = pnand %p1333_p5, %p1332_p0 }
 0x2f9   : > { %p788_p7 = pneg %p787_p3 }
 0x2fb   : > { %1029 = dma.done.wait (%p788_p7), %s582_s9, 128  }
 0x2fc   : > { %1031 = vsyncadd (%p788_p7), %s582_s9, 4294967168  ;;  %s591_s14 = scalar_lea.sflag [#allocation13], %s581_s10 }
 0x2fd   : > { %1033 = dma.done.wait (%p788_p7), %s591_s14, 128  }
 0x2fe   : > { %1035 = vsyncadd (%p788_p7), %s591_s14, 4294967168  ;;  %p24_p6 = scmp.ge.s32.totalorder %s1174_s28, 4   ;;  %s1334_s18 = smov %s1042_s19 }
 0x2ff   : > { %s1335_s19 = smov %s1046_s20  ;;  %s1336_s20 = smov %s1184_s6 }
 0x300   : > { %s1337_s21 = smov %s1174_s28  ;;  %26 = sbr.rel (!%p24_p6) target bundleno = 9 (0x9), region = 110 }
 0x305   :  { %596 = vsyncpa [#allocation4], 1 }
 0x306   :  { %598 = vsyncpa [#allocation4 + $0x1], 1 }
 0x307   :  { %599 = vsyncpa [#allocation7], 1 }
 0x308   :  { %600 = vsyncpa [#allocation10], 1 }
 0x309   :  { %601 = vsyncpa [#allocation5], 1 }
 0x30a   :  { %603 = vsyncpa [#allocation5 + $0x1], 1 }
 0x30b   :  { %604 = vsyncpa [#allocation13], 1 }
 0x30c   :  { %606 = vsyncpa [#allocation13 + $0x1], 1 }

</bundles_post_ra>
